<compile_context>
chip_gen: v7x
topology: tpu7x:2x2x1
jax: 0.10.0
libtpu: 0.0.40
codegen_flags: <defaults>
</compile_context>

<pallas_src>
import jax
import jax.numpy as jnp
from jax import lax
from jax.experimental import pallas as pl
from jax.experimental.pallas import tpu as pltpu

K_PAD = 128     # concat/contraction dim padded to one full lane tile
                # (lanes: [0:total_dim]=data, [total_dim]=1.0 bias lane, rest 0)
OUT_PAD = 128   # w2's N padded to a full lane tile (output itself is un-padded)


def _mlp_head_kernel(feat_ref, past_ref, intent_ref,
                     w1_ref, w2_ref, b2_ref,
                     o_ref, x_sc):
    """One batch tile: concat-in-VMEM -> matmul(+folded bias) -> ReLU -> matmul -> +b2."""
    d0 = feat_ref.shape[1]
    d1 = past_ref.shape[1]
    d2 = intent_ref.shape[1]
    d_tot = d0 + d1 + d2
    tb = x_sc.shape[0]
    tail = x_sc.shape[1] - d_tot

    # Concatenate the three bf16 activation pieces into the padded scratch.
    x_sc[:, 0:d0] = feat_ref[...]
    x_sc[:, d0:d0 + d1] = past_ref[...]
    x_sc[:, d0 + d1:d_tot] = intent_ref[...]
    # Padding tail: 1.0 in the bias lane (column d_tot, multiplies the folded
    # b1 row of w1), 0.0 beyond.  Written every step (not hoisted to step 0:
    # under "parallel" megacore sharding core 1 never executes step 0).
    lane = lax.broadcasted_iota(jnp.int32, (tb, tail), 1)
    x_sc[:, d_tot:] = jnp.where(lane == 0, 1.0, 0.0).astype(x_sc.dtype)

    # Layer 1: bf16 operands, f32 accumulation on the MXU; b1 folded into w1.
    h = jnp.maximum(
        jnp.dot(x_sc[...], w1_ref[...], preferred_element_type=jnp.float32), 0.0)
    # (dropout p=0.2 is identity in eval mode)

    # Layer 2: bf16 operands, f32 accumulation; store only the real 40 lanes.
    y = jnp.dot(h.astype(jnp.bfloat16), w2_ref[...],
                preferred_element_type=jnp.float32)
    out_dim = o_ref.shape[1]
    o_ref[...] = y[:, :out_dim] + b2_ref[...]


def _pick_batch_tile(B, batch_tile):
    """TB: multiple of 16 (bf16 sublanes / MXU M), >=2 grid steps when B allows,
    bounded by batch_tile (VMEM budget).  Tiny batches use one full block."""
    batch_tile = max(16, (batch_tile // 16) * 16)
    if B <= 16:
        return B                      # block dim == full array dim (allowed)
    half = -(-B // 2)                 # cdiv(B, 2): guarantees >= 2 grid steps
    tb = ((half + 15) // 16) * 16     # round up to a multiple of 16
    return min(batch_tile, tb)


def e2e_model_forward(feat, past, intent_emb, params, future_len, *, batch_tile=1024):
    """JAX wrapper matching E2EModel.forward (eval mode)."""
    B = feat.shape[0]
    # bf16 activations: halves input DMA; MXU-native operand dtype.
    feat = feat.astype(jnp.bfloat16)
    past_flat = past.reshape(B, -1).astype(jnp.bfloat16)
    intent_emb = intent_emb.astype(jnp.bfloat16)

    w1, w2, b2 = params["w1"], params["w2"], params["b2"]
    hidden = w1.shape[1]
    out_dim = future_len * 2
    assert b2.shape == (1, out_dim)

    d0, d1, d2 = feat.shape[1], past_flat.shape[1], intent_emb.shape[1]
    assert d0 + d1 + d2 < K_PAD       # one padding lane reserved for folded b1

    TB = _pick_batch_tile(B, batch_tile)
    grid = (pl.cdiv(B, TB),)          # ragged edge block handled by Pallas masking

    y = pl.pallas_call(
        _mlp_head_kernel,
        out_shape=jax.ShapeDtypeStruct((B, out_dim), jnp.float32),
        grid_spec=pltpu.PrefetchScalarGridSpec(
            num_scalar_prefetch=0,
            grid=grid,
            in_specs=[
                pl.BlockSpec((TB, d0), lambda i: (i, 0)),
                pl.BlockSpec((TB, d1), lambda i: (i, 0)),
                pl.BlockSpec((TB, d2), lambda i: (i, 0)),
                # Constant block index -> weights/bias stay VMEM-resident.
                pl.BlockSpec((K_PAD, hidden), lambda i: (0, 0)),
                pl.BlockSpec((hidden, OUT_PAD), lambda i: (0, 0)),
                pl.BlockSpec((1, out_dim), lambda i: (0, 0)),
            ],
            out_specs=pl.BlockSpec((TB, out_dim), lambda i: (i, 0)),
            scratch_shapes=[pltpu.VMEM((TB, K_PAD), jnp.bfloat16)],
        ),
        compiler_params=pltpu.CompilerParams(
            dimension_semantics=("parallel",),   # shard batch tiles across TCs (v7x)
        ),
    )(feat, past_flat, intent_emb, w1, w2, b2)

    return y.reshape(B, future_len, 2)


def init_params(key, total_dim, hidden, out_dim):
    """Deterministic synthetic init (roughly PyTorch-Linear-like scales), f32."""
    k1, k2, k3, k4 = jax.random.split(key, 4)
    bound1 = 1.0 / jnp.sqrt(total_dim)
    bound2 = 1.0 / jnp.sqrt(hidden)
    return {
        # stored as (in, out) = W^T relative to PyTorch's (out, in)
        "w1": jax.random.uniform(k1, (total_dim, hidden), jnp.float32, -bound1, bound1),
        "b1": jax.random.uniform(k2, (1, hidden), jnp.float32, -bound1, bound1),
        "w2": jax.random.uniform(k3, (hidden, out_dim), jnp.float32, -bound2, bound2),
        "b2": jax.random.uniform(k4, (1, out_dim), jnp.float32, -bound2, bound2),
    }


def prepare_params(raw, total_dim, hidden, out_dim):
    """One-time weight prep: bf16 cast, K pad 80->128 with b1 folded into the
    bias lane row, w2 N pad 40->128.  b2 stays f32 (added after the MXU)."""
    assert total_dim < K_PAD and out_dim <= OUT_PAD
    w1 = jnp.zeros((K_PAD, hidden), jnp.bfloat16)
    w1 = w1.at[:total_dim, :].set(raw["w1"].astype(jnp.bfloat16))
    # Fold b1 into row `total_dim`: the kernel feeds 1.0 in that input lane.
    w1 = w1.at[total_dim, :].set(raw["b1"].reshape(hidden).astype(jnp.bfloat16))
    w2 = jnp.zeros((hidden, OUT_PAD), jnp.bfloat16)
    w2 = w2.at[:, :out_dim].set(raw["w2"].astype(jnp.bfloat16))
    b2 = raw["b2"].reshape(1, out_dim).astype(jnp.float32)
    return {"w1": w1, "w2": w2, "b2": b2}


if __name__ == "__main__":
    # Small shapes consistent with the module signature.
    batch = 8
    feature_dim = 32
    past_len = 16
    intent_emb_dim = 16
    future_len = 20
    hidden = 1024

    total_dim = feature_dim + past_len * 2 + intent_emb_dim   # 32 + 32 + 16 = 80
    out_dim = future_len * 2                                  # 40

    key = jax.random.PRNGKey(0)
    kf, kp, ki, kw = jax.random.split(key, 4)

    feat = jax.random.normal(kf, (batch, feature_dim), jnp.float32)
    past = jax.random.normal(kp, (batch, past_len, 2), jnp.float32)
    intent_emb = jax.random.normal(ki, (batch, intent_emb_dim), jnp.float32)

    raw_params = init_params(kw, total_dim, hidden, out_dim)
    params = prepare_params(raw_params, total_dim, hidden, out_dim)

    out = e2e_model_forward(feat, past, intent_emb, params, future_len)
    out = jax.block_until_ready(out)
    assert out.shape == (batch, future_len, 2), out.shape

    # Reference 1: same bf16-rounded inputs/weights, f32 math (tight check).
    x_bf = jnp.concatenate(
        [feat.astype(jnp.bfloat16),
         past.reshape(batch, -1).astype(jnp.bfloat16),
         intent_emb.astype(jnp.bfloat16)], axis=1).astype(jnp.float32)
    w1f = params["w1"][:total_dim, :].astype(jnp.float32)
    b1f = params["w1"][total_dim, :].astype(jnp.float32)      # folded bias row
    w2f = params["w2"][:, :out_dim].astype(jnp.float32)
    h_ref = jnp.maximum(x_bf @ w1f + b1f, 0.0)
    y_ref = (h_ref.astype(jnp.bfloat16).astype(jnp.float32) @ w2f
             + params["b2"]).reshape(batch, future_len, 2)

    rel = jnp.linalg.norm(out - y_ref) / jnp.linalg.norm(y_ref)
    max_abs = jnp.max(jnp.abs(out - y_ref))
    assert jnp.allclose(out, y_ref, atol=3e-2, rtol=3e-2), (float(max_abs), float(rel))
    assert float(rel) < 2e-2, float(rel)

    # Reference 2: true f32 model (loose check of bf16 drift vs. PyTorch math).
    x_f32 = jnp.concatenate([feat, past.reshape(batch, -1), intent_emb], axis=1)
    h32 = jnp.maximum(x_f32 @ raw_params["w1"] + raw_params["b1"], 0.0)
    y32 = (h32 @ raw_params["w2"] + raw_params["b2"]).reshape(batch, future_len, 2)
    rel32 = jnp.linalg.norm(out - y32) / jnp.linalg.norm(y32)
    assert float(rel32) < 1e-1, float(rel32)

    print("KERNEL_OK")
</pallas_src>

<mosaic_0001>
module attributes {stable_mosaic.version = 11 : i64} {
  func.func @_mlp_head_kernel(%arg0: i32, %arg1: memref<8x32xbf16, #tpu.memory_space<vmem>>, %arg2: memref<8x32xbf16, #tpu.memory_space<vmem>>, %arg3: memref<8x16xbf16, #tpu.memory_space<vmem>>, %arg4: memref<128x1024xbf16, #tpu.memory_space<vmem>>, %arg5: memref<1024x128xbf16, #tpu.memory_space<vmem>>, %arg6: memref<1x40xf32, #tpu.memory_space<vmem>>, %arg7: memref<8x40xf32, #tpu.memory_space<vmem>>, %arg8: memref<8x128xbf16, #tpu.memory_space<vmem>>) attributes {dimension_semantics = [#tpu.dimension_semantics<parallel>], iteration_bounds = array<i64: 1>, scalar_prefetch = 0 : i64, scratch_operands = 1 : i64, tpu.core_type = #tpu.core_type<tc>, window_params = [{transform_indices = @transform_0, window_bounds = array<i64: 8, 32>}, {transform_indices = @transform_1, window_bounds = array<i64: 8, 32>}, {transform_indices = @transform_2, window_bounds = array<i64: 8, 16>}, {pipeline_mode = #tpu.pipeline_mode<synchronous>, transform_indices = @transform_3, window_bounds = array<i64: 128, 1024>}, {pipeline_mode = #tpu.pipeline_mode<synchronous>, transform_indices = @transform_4, window_bounds = array<i64: 1024, 128>}, {pipeline_mode = #tpu.pipeline_mode<synchronous>, transform_indices = @transform_5, window_bounds = array<i64: 1, 40>}, {transform_indices = @transform_6, window_bounds = array<i64: 8, 40>}]} {
    %c0 = arith.constant 0 : index
    %c0_0 = arith.constant 0 : index
    %0 = vector.load %arg1[%c0, %c0_0] : memref<8x32xbf16, #tpu.memory_space<vmem>>, vector<8x32xbf16>
    %c0_1 = arith.constant 0 : index
    %c0_2 = arith.constant 0 : index
    %1 = vector.load %arg8[%c0_1, %c0_2] : memref<8x128xbf16, #tpu.memory_space<vmem>>, vector<8x32xbf16>
    tpu.vector_store %arg8[%c0_1, %c0_2], %0 {strides = array<i32>} : memref<8x128xbf16, #tpu.memory_space<vmem>>, vector<8x32xbf16>,
    %c0_3 = arith.constant 0 : index
    %c0_4 = arith.constant 0 : index
    %2 = vector.load %arg2[%c0_3, %c0_4] : memref<8x32xbf16, #tpu.memory_space<vmem>>, vector<8x32xbf16>
    %c0_5 = arith.constant 0 : index
    %c32 = arith.constant 32 : index
    %3 = vector.load %arg8[%c0_5, %c32] : memref<8x128xbf16, #tpu.memory_space<vmem>>, vector<8x32xbf16>
    tpu.vector_store %arg8[%c0_5, %c32], %2 {strides = array<i32>} : memref<8x128xbf16, #tpu.memory_space<vmem>>, vector<8x32xbf16>,
    %c0_6 = arith.constant 0 : index
    %c0_7 = arith.constant 0 : index
    %4 = vector.load %arg3[%c0_6, %c0_7] : memref<8x16xbf16, #tpu.memory_space<vmem>>, vector<8x16xbf16>
    %c0_8 = arith.constant 0 : index
    %c64 = arith.constant 64 : index
    %5 = vector.load %arg8[%c0_8, %c64] : memref<8x128xbf16, #tpu.memory_space<vmem>>, vector<8x16xbf16>
    tpu.vector_store %arg8[%c0_8, %c64], %4 {strides = array<i32>} : memref<8x128xbf16, #tpu.memory_space<vmem>>, vector<8x16xbf16>,
    %6 = tpu.iota {dimensions = array<i32: 1>} : vector<8x48xi32>
    %c0_i32 = arith.constant 0 : i32
    %7 = vector.broadcast %c0_i32 : i32 to vector<8x48xi32>
    %8 = arith.cmpi eq, %6, %7 : vector<8x48xi32>
    %cst = arith.constant 1.000000e+00 : f32
    %cst_9 = arith.constant 0.000000e+00 : f32
    %9 = vector.broadcast %cst : f32 to vector<8x48xf32>
    %10 = vector.broadcast %cst_9 : f32 to vector<8x48xf32>
    %11 = arith.select %8, %9, %10 : vector<8x48xi1>, vector<8x48xf32>
    %12 = arith.truncf %11 : vector<8x48xf32> to vector<8x48xbf16>
    %c0_10 = arith.constant 0 : index
    %c80 = arith.constant 80 : index
    %13 = vector.load %arg8[%c0_10, %c80] : memref<8x128xbf16, #tpu.memory_space<vmem>>, vector<8x48xbf16>
    tpu.vector_store %arg8[%c0_10, %c80], %12 {strides = array<i32>} : memref<8x128xbf16, #tpu.memory_space<vmem>>, vector<8x48xbf16>,
    %c0_11 = arith.constant 0 : index
    %c0_12 = arith.constant 0 : index
    %14 = vector.load %arg8[%c0_11, %c0_12] : memref<8x128xbf16, #tpu.memory_space<vmem>>, vector<8x128xbf16>
    %c0_13 = arith.constant 0 : index
    %c0_14 = arith.constant 0 : index
    %15 = vector.load %arg4[%c0_13, %c0_14] : memref<128x1024xbf16, #tpu.memory_space<vmem>>, vector<128x1024xbf16>
    %cst_15 = arith.constant dense<0.000000e+00> : vector<8x1024xf32>
    %16 = tpu.matmul %14, %15, %cst_15 {dimension_numbers = #tpu.dot_dimension_numbers<[1], [0], [0], [1], [0, 0, 1, 1], [], []>} : vector<8x128xbf16>, vector<128x1024xbf16>, vector<8x1024xf32> -> vector<8x1024xf32>
    %cst_16 = arith.constant 0.000000e+00 : f32
    %17 = vector.broadcast %cst_16 : f32 to vector<8x1024xf32>
    %18 = arith.maximumf %16, %17 : vector<8x1024xf32>
    %19 = arith.truncf %18 : vector<8x1024xf32> to vector<8x1024xbf16>
    %c0_17 = arith.constant 0 : index
    %c0_18 = arith.constant 0 : index
    %20 = vector.load %arg5[%c0_17, %c0_18] : memref<1024x128xbf16, #tpu.memory_space<vmem>>, vector<1024x128xbf16>
    %cst_19 = arith.constant dense<0.000000e+00> : vector<8x128xf32>
    %21 = tpu.matmul %19, %20, %cst_19 {dimension_numbers = #tpu.dot_dimension_numbers<[1], [0], [0], [1], [0, 0, 1, 1], [], []>} : vector<8x1024xbf16>, vector<1024x128xbf16>, vector<8x128xf32> -> vector<8x128xf32>
    %22 = vector.extract_strided_slice %21 {offsets = [0, 0], sizes = [8, 40], strides = [1, 1]} : vector<8x128xf32> to vector<8x40xf32>
    %c0_20 = arith.constant 0 : index
    %c0_21 = arith.constant 0 : index
    %23 = vector.load %arg6[%c0_20, %c0_21] : memref<1x40xf32, #tpu.memory_space<vmem>>, vector<1x40xf32>
    %24 = vector.broadcast %23 : vector<1x40xf32> to vector<8x40xf32>
    %25 = arith.addf %22, %24 : vector<8x40xf32>
    %c0_22 = arith.constant 0 : index
    %c0_23 = arith.constant 0 : index
    %26 = vector.load %arg7[%c0_22, %c0_23] : memref<8x40xf32, #tpu.memory_space<vmem>>, vector<8x40xf32>
    tpu.vector_store %arg7[%c0_22, %c0_23], %25 {strides = array<i32>} : memref<8x40xf32, #tpu.memory_space<vmem>>, vector<8x40xf32>,
    return
  }
  func.func @transform_0(%arg0: i32) -> (i32, i32) {
    %c0_i32 = arith.constant 0 : i32
    %c0_i32_0 = arith.constant 0 : i32
    return %arg0, %c0_i32 : i32, i32
  }
  func.func @transform_1(%arg0: i32) -> (i32, i32) {
    %c0_i32 = arith.constant 0 : i32
    %c0_i32_0 = arith.constant 0 : i32
    return %arg0, %c0_i32 : i32, i32
  }
  func.func @transform_2(%arg0: i32) -> (i32, i32) {
    %c0_i32 = arith.constant 0 : i32
    %c0_i32_0 = arith.constant 0 : i32
    return %arg0, %c0_i32 : i32, i32
  }
  func.func @transform_3(%arg0: i32) -> (i32, i32) {
    %c0_i32 = arith.constant 0 : i32
    %c0_i32_0 = arith.constant 0 : i32
    %c0_i32_1 = arith.constant 0 : i32
    return %c0_i32, %c0_i32_0 : i32, i32
  }
  func.func @transform_4(%arg0: i32) -> (i32, i32) {
    %c0_i32 = arith.constant 0 : i32
    %c0_i32_0 = arith.constant 0 : i32
    %c0_i32_1 = arith.constant 0 : i32
    return %c0_i32, %c0_i32_0 : i32, i32
  }
  func.func @transform_5(%arg0: i32) -> (i32, i32) {
    %c0_i32 = arith.constant 0 : i32
    %c0_i32_0 = arith.constant 0 : i32
    %c0_i32_1 = arith.constant 0 : i32
    return %c0_i32, %c0_i32_0 : i32, i32
  }
  func.func @transform_6(%arg0: i32) -> (i32, i32) {
    %c0_i32 = arith.constant 0 : i32
    %c0_i32_0 = arith.constant 0 : i32
    return %arg0, %c0_i32 : i32, i32
  }
}

</mosaic_0001>

<bundles_post_ra>
// kernel: tpu_custom_call.1
= control target key start
LH: loop header
LB: loop body
LE: loop exit
PB: predicated region body
PF: predicated region fallthrough
CT: control target
= control target key end

     0   :  { %11 = vsyncpa [#allocation4], 0  ;;  %s1933_s0 = inlined_call_operand.hbm [shape: bf16[8,32], index: 0, kind: input, shape index: {}]   ;;  %s1934_s1 = inlined_call_operand.hbm [shape: bf16[8,32], index: 1, kind: input, shape index: {}]   ;;  %s1935_s2 = inlined_call_operand.vmem [shape: bf16[8,16], index: 2, kind: input, shape index: {}]   ;;  %s1936_s3 = inlined_call_operand.hbm [shape: bf16[128,1024], index: 3, kind: input, shape index: {}]   ;;  %s1937_s4 = inlined_call_operand.hbm [shape: bf16[1024,128], index: 4, kind: input, shape index: {}]   ;;  %s1938_s5 = inlined_call_operand.vmem [shape: f32[1,40], index: 5, kind: input, shape index: {}]   ;;  %s1939_s6 = inlined_call_operand.hbm [shape: f32[8,40], index: 6, kind: output, shape index: {}]  }
   0x1   :  { %12 = vsyncpa [#allocation7], 0 }
   0x2   :  { %13 = vsyncpa [#allocation10], 0 }
   0x3   :  { %14 = vsyncpa [#allocation5], 0  ;;  %s1783_s21 = smov [#allocation6]   ;;  %s1784_s23 = smov [#allocation3]  }
   0x4   :  { %s31_s22 = sshll.u32 %s1783_s21, 4  ;;  %s21_s24 = sshll.u32 %s1784_s23, 4  ;;  %s32_s22 = int_to_ptr.vmem [resolvable:$true] %s31_s22  ;;  %s22_s24 = int_to_ptr.vmem [resolvable:$true] %s21_s24 }
   0x5   :  { %s1665_s27 = scalar_lea.hbm %s1934_s1, 64 }
   0x6   :  { %p1666_p0 = scmp.ne.s32.totalorder %s1934_s1, %s1665_s27  ;;  %p1669_p1 = scmp.lt.u32.totalorder %s1665_s27, %s1934_s1 }
   0x8   :  { %p1671_p2 = pnand %p1669_p1, %p1666_p0 }
   0xa   :  { %1674 = shalt.err (!%p1671_p2)
}
   0xb   :  { %s1675_s8 = scalar_lea.vmem %s32_s22, 64  ;;  %p1680_p4 = scmp.lt.s32.totalorder %s32_s22, %s32_s22 }
   0xc   :  { %p1676_p3 = scmp.ne.s32.totalorder %s32_s22, %s1675_s8  ;;  %p1681_p5 = scmp.lt.s32.totalorder %s1675_s8, %s1675_s8 }
   0xe   :  { %p1682_p6 = por %p1681_p5, %p1680_p4 }
  0x10   :  { %p1683_p7 = pnand %p1682_p6, %p1676_p3 }
  0x12   :  { %1686 = shalt.err (!%p1683_p7)
}
  0x13   :  { %34 = dma.hbm_to_vmem [thread:$0]  %s1934_s1, 64, %s32_s22, [#allocation7]  }
  0x14   :  { %s1687_s13 = scalar_lea.hbm %s1933_s0, 64 }
  0x15   :  { %p1688_p8 = scmp.ne.s32.totalorder %s1933_s0, %s1687_s13  ;;  %p1691_p9 = scmp.lt.u32.totalorder %s1687_s13, %s1933_s0 }
  0x17   :  { %p1693_p10 = pnand %p1691_p9, %p1688_p8 }
  0x19   :  { %1696 = shalt.err (!%p1693_p10)
}
  0x1a   :  { %s1697_s18 = scalar_lea.vmem %s22_s24, 64  ;;  %p1702_p12 = scmp.lt.s32.totalorder %s22_s24, %s22_s24 }
  0x1b   :  { %p1698_p11 = scmp.ne.s32.totalorder %s22_s24, %s1697_s18  ;;  %p1703_p13 = scmp.lt.s32.totalorder %s1697_s18, %s1697_s18 }
  0x1d   :  { %p1704_p0 = por %p1703_p13, %p1702_p12 }
  0x1f   :  { %p1705_p1 = pnand %p1704_p0, %p1698_p11 }
  0x21   :  { %1708 = shalt.err (!%p1705_p1)
}
  0x22   :  { %24 = dma.hbm_to_vmem [thread:$0]  %s1933_s0, 64, %s22_s24, [#allocation4]  }
  0x23   :  { %s1785_s20 = smov [#allocation8]   ;;  %s1709_s25 = scalar_lea.hbm %s1936_s3, 8192 }
  0x24   :  { %s42_s21 = sshll.u32 %s1785_s20, 4  ;;  %p1710_p2 = scmp.ne.s32.totalorder %s1936_s3, %s1709_s25  ;;  %s43_s21 = int_to_ptr.vmem [resolvable:$true] %s42_s21 }
  0x25   :  { %p1713_p3 = scmp.lt.u32.totalorder %s1709_s25, %s1936_s3 }
  0x27   :  { %p1715_p4 = pnand %p1713_p3, %p1710_p2 }
  0x29   :  { %1718 = shalt.err (!%p1715_p4)
}
  0x2a   :  { %s1719_s30 = scalar_lea.vmem %s43_s21, 8192  ;;  %p1724_p6 = scmp.lt.s32.totalorder %s43_s21, %s43_s21 }
  0x2b   :  { %p1720_p5 = scmp.ne.s32.totalorder %s43_s21, %s1719_s30  ;;  %p1725_p7 = scmp.lt.s32.totalorder %s1719_s30, %s1719_s30 }
  0x2d   :  { %p1726_p8 = por %p1725_p7, %p1724_p6 }
  0x2f   :  { %p1727_p9 = pnand %p1726_p8, %p1720_p5 }
  0x31   :  { %1730 = shalt.err (!%p1727_p9)
}
  0x32   :  { %s1786_s0 = smov 512   ;;  %s1787_s24 = smov 32  }
  0x33   :  { %48 = dma.hbm_to_vmem [thread:$0]  %s1936_s3, 8192, %s43_s21, [#allocation7], %s1786_s0, %s1786_s0, %s1787_s24  }
  0x34   :  { %s1788_s9 = smov [#allocation9]   ;;  %s1731_s13 = scalar_lea.hbm %s1937_s4, 8192 }
  0x35   :  { %s54_s10 = sshll.u32 %s1788_s9, 4  ;;  %p1732_p10 = scmp.ne.s32.totalorder %s1937_s4, %s1731_s13  ;;  %s55_s10 = int_to_ptr.vmem [resolvable:$true] %s54_s10 }
  0x36   :  { %p1735_p11 = scmp.lt.u32.totalorder %s1731_s13, %s1937_s4 }
  0x38   :  { %p1737_p12 = pnand %p1735_p11, %p1732_p10 }
  0x3a   :  { %1740 = shalt.err (!%p1737_p12)
}
  0x3b   :  { %s1741_s18 = scalar_lea.vmem %s55_s10, 8192  ;;  %p1746_p0 = scmp.lt.s32.totalorder %s55_s10, %s55_s10 }
  0x3c   :  { %p1742_p13 = scmp.ne.s32.totalorder %s55_s10, %s1741_s18  ;;  %p1747_p1 = scmp.lt.s32.totalorder %s1741_s18, %s1741_s18 }
  0x3e   :  { %p1748_p2 = por %p1747_p1, %p1746_p0 }
  0x40   :  { %p1749_p3 = pnand %p1748_p2, %p1742_p13 }
  0x42   :  { %1752 = shalt.err (!%p1749_p3)
}
  0x43   :  { %s1789_s3 = smov 64   ;;  %s1790_s1 = smov 4  }
  0x44   :  { %60 = dma.hbm_to_vmem [thread:$0]  %s1937_s4, 8192, %s55_s10, [#allocation10], %s1789_s3, %s1789_s3, %s1790_s1  }
  0x45   :  { %1775 = dma.done.wait [#allocation4], 64  }
  0x46   :  { %1776 = vsyncadd [#allocation4], 4294967232 }
  0x47   :  { %1777 = dma.done.wait [#allocation7], 8256  }
  0x48   :  { %1778 = vsyncadd [#allocation7], 4294959040 }
  0x49   :  { %1779 = dma.done.wait [#allocation10], 8192  }
  0x4a   :  { %1780 = vsyncadd [#allocation10], 4294959104  ;;  %v93_v0 = vlaneseq  ;;  %v1791_v2 = vmov 0   ;;  %v1792_v3 = vmov 0.0   ;;  %v79_v6 = vld [vmem:[#allocation6] sm:$0xf] }
  0x4b   :  { %523 = vmatprep.mubr.bf16.mxu0 %v1791_v2  ;;  %564 = vmatprep.mubr.bf16.mxu1 %v1791_v2  ;;  %v86_v7 = vld [vmem:[%s1935_s2] sm:$0xf]  ;;  %v107_v8 = vld [vmem:[#allocation8] sm:$0xff]  ;;  %s1793_s22 = smov 80   ;;  %v108_v10 = vld [vmem:[#allocation8 + $0x8] sm:$0xff]  ;;  %vm77_vm1 = vcmask 257024  }
  0x4c   :  { %v94_v1 = vand.u32 127, %v93_v0  ;;  %81 = vrot.lane.b32.xlu0 %v79_v6, %s1787_s24  ;;  %v111_v9 = vld [vmem:[#allocation8 + $0x20] sm:$0xff]  ;;  %v112_v11 = vld [vmem:[#allocation8 + $0x28] sm:$0xff]  ;;  %v76_v32 = vld [vmem:[#allocation3] sm:$0xf]  ;;  %vm84_vm2 = vcmask 519424  }
  0x4d   :  { %v1372_v12 = vcombine.high %v107_v8, %v111_v9  ;;  %v1374_v13 = vcombine.high %v108_v10, %v112_v11  ;;  %v1371_v14 = vcombine.low %v107_v8, %v111_v9  ;;  %v1373_v15 = vcombine.low %v108_v10, %v112_v11  ;;  %v115_v16 = vld [vmem:[#allocation8 + $0x40] sm:$0xff]  ;;  %v116_v18 = vld [vmem:[#allocation8 + $0x48] sm:$0xff]  ;;  %78 = vst.msk [vmem:[#allocation2] sm:$0xf] %vm77_vm1, %v76_v32  ;;  %v1888_v43 = vld [vmem:[#allocation8 + $0x10] sm:$0xff]  ;;  %s1794_s25 = smov [#allocation11]  }
  0x4e   :  { %vm95_vm0 = vcmp.eq.s32.totalorder %v94_v1, 0  ;;  %v119_v17 = vld [vmem:[#allocation8 + $0x60] sm:$0xff]  ;;  %v120_v20 = vld [vmem:[#allocation8 + $0x68] sm:$0xff]  ;;  %v1890_v44 = vld [vmem:[#allocation8 + $0x30] sm:$0xff]  ;;  %vm91_vm3 = vcmask 650752   ;;  %vm104_vm4 = vcmask 1044096  }
  0x4f   :  { %v96_v4 = vsel %vm95_vm0, 1.0, %v1792_v3  ;;  %v1380_v19 = vcombine.high %v115_v16, %v119_v17  ;;  %v123_v21 = vld [vmem:[#allocation8 + $0x80] sm:$0xff]  ;;  %491 = vmatprep.subr.bf16.mxu0 %v1372_v12  ;;  %532 = vmatprep.subr.bf16.mxu1 %v1374_v13  ;;  %v1382_v23 = vcombine.high %v116_v18, %v120_v20  ;;  %v124_v24 = vld [vmem:[#allocation8 + $0x88] sm:$0xff]  ;;  %v1379_v26 = vcombine.low %v115_v16, %v119_v17  ;;  %v1892_v45 = vld [vmem:[#allocation8 + $0x18] sm:$0xff]  ;;  %s1359_s26 = sshll.u32 %s1794_s25, 4  ;;  %s1360_s26 = int_to_ptr.vmem [resolvable:$true] %s1359_s26 }
  0x50   :  { %v1500_v5 = vpack.c.bf16 %v96_v4, %v96_v4  ;;  %v127_v22 = vld [vmem:[#allocation8 + $0xa0] sm:$0xff]  ;;  %v128_v25 = vld [vmem:[#allocation8 + $0xa8] sm:$0xff]  ;;  %88 = vrot.lane.b32.xlu0 %v86_v7, %s1789_s3  ;;  %492 = vmatpush1.bf16.msra.mxu0 %v1371_v14  ;;  %v1381_v27 = vcombine.low %v116_v18, %v120_v20  ;;  %v1894_v46 = vld [vmem:[#allocation8 + $0x38] sm:$0xff]  ;;  %v1375_v48 = vcombine.low %v1888_v43, %v1890_v44  ;;  %vm1351_vm5 = vcmask 326656   ;;  %s1753_s27 = scalar_lea.vmem %s1360_s26, 128  ;;  %p1758_p5 = scmp.lt.s32.totalorder %s1360_s26, %s1360_s26 }
  0x51   :  { %533 = vmatpush1.bf16.msra.mxu1 %v1373_v15  ;;  %493 = vmatprep.subr.bf16.mxu0 %v1380_v19  ;;  %v1388_v28 = vcombine.high %v123_v21, %v127_v22  ;;  %v1390_v29 = vcombine.high %v124_v24, %v128_v25  ;;  %v131_v30 = vld [vmem:[#allocation8 + $0xc0] sm:$0xff]  ;;  %v132_v33 = vld [vmem:[#allocation8 + $0xc8] sm:$0xff]  ;;  %v1387_v35 = vcombine.low %v123_v21, %v127_v22  ;;  %v117_v21 = vld [vmem:[#allocation8 + $0x50] sm:$0xff]  ;;  %p1754_p4 = scmp.ne.s32.totalorder %s1360_s26, %s1753_s27  ;;  %p1759_p6 = scmp.lt.s32.totalorder %s1753_s27, %s1753_s27 }
  0x52   :  { %101 = vrot.lane.b32.xlu1 %v1500_v5, %s1793_s22  ;;  %534 = vmatprep.subr.bf16.mxu1 %v1382_v23  ;;  %v135_v31 = vld [vmem:[#allocation8 + $0xe0] sm:$0xff]  ;;  %v136_v34 = vld [vmem:[#allocation8 + $0xe8] sm:$0xff]  ;;  %v1389_v36 = vcombine.low %v124_v24, %v128_v25  ;;  %v1377_v49 = vcombine.low %v1892_v45, %v1894_v46  ;;  %v1376_v16 = vcombine.high %v1888_v43, %v1890_v44  ;;  %v121_v22 = vld [vmem:[#allocation8 + $0x70] sm:$0xff] }
  0x53   :  { %v1396_v37 = vcombine.high %v131_v30, %v135_v31  ;;  %v139_v38 = vld [vmem:[#allocation8 + $0x100] sm:$0xff]  ;;  %v1398_v40 = vcombine.high %v132_v33, %v136_v34  ;;  %v140_v41 = vld [vmem:[#allocation8 + $0x108] sm:$0xff]  ;;  %v1395_v47 = vcombine.low %v131_v30, %v135_v31  ;;  %v1397_v50 = vcombine.low %v132_v33, %v136_v34  ;;  %v118_v23 = vld [vmem:[#allocation8 + $0x58] sm:$0xff]  ;;  %p1760_p7 = por %p1759_p6, %p1758_p5 }
  0x54   :  { %494 = vmatpush1.bf16.msra.mxu0 %v1379_v26  ;;  %v143_v39 = vld [vmem:[#allocation8 + $0x120] sm:$0xff]  ;;  %v144_v42 = vld [vmem:[#allocation8 + $0x128] sm:$0xff]  ;;  %v1378_v17 = vcombine.high %v1892_v45, %v1894_v46  ;;  %v122_v24 = vld [vmem:[#allocation8 + $0x78] sm:$0xff]  ;;  %v1384_v25 = vcombine.high %v117_v21, %v121_v22  ;;  %v1383_v32 = vcombine.low %v117_v21, %v121_v22 }
  0x55   :  { %535 = vmatpush1.bf16.msra.mxu1 %v1381_v27  ;;  %495 = vmatprep.subr.bf16.mxu0 %v1388_v28  ;;  %v1404_v51 = vcombine.high %v139_v38, %v143_v39  ;;  %v1406_v52 = vcombine.high %v140_v41, %v144_v42  ;;  %v147_v53 = vld [vmem:[#allocation8 + $0x140] sm:$0xff]  ;;  %v148_v55 = vld [vmem:[#allocation8 + $0x148] sm:$0xff]  ;;  %v1403_v57 = vcombine.low %v139_v38, %v143_v39  ;;  %v125_v27 = vld [vmem:[#allocation8 + $0x90] sm:$0xff]  ;;  %p1761_p8 = pnand %p1760_p7, %p1754_p4 }
  0x56   :  { %536 = vmatprep.subr.bf16.mxu1 %v1390_v29  ;;  %v151_v54 = vld [vmem:[#allocation8 + $0x160] sm:$0xff]  ;;  %v152_v56 = vld [vmem:[#allocation8 + $0x168] sm:$0xff]  ;;  %v1405_v58 = vcombine.low %v140_v41, %v144_v42  ;;  %v1386_v26 = vcombine.high %v118_v23, %v122_v24  ;;  %v129_v28 = vld [vmem:[#allocation8 + $0xb0] sm:$0xff]  ;;  %v1385_v33 = vcombine.low %v118_v23, %v122_v24 }
  0x57   :  { %v1412_v59 = vcombine.high %v147_v53, %v151_v54  ;;  %v155_v60 = vld [vmem:[#allocation8 + $0x180] sm:$0xff]  ;;  %v1414_v62 = vcombine.high %v148_v55, %v152_v56  ;;  %v156_v63 = vld [vmem:[#allocation8 + $0x188] sm:$0xff]  ;;  %v1411_v1 = vcombine.low %v147_v53, %v151_v54  ;;  %v1413_v3 = vcombine.low %v148_v55, %v152_v56  ;;  %v126_v30 = vld [vmem:[#allocation8 + $0x98] sm:$0xff] }
  0x58   :  { %496 = vmatpush1.bf16.msra.mxu0 %v1387_v35  ;;  %v159_v61 = vld [vmem:[#allocation8 + $0x1a0] sm:$0xff]  ;;  %v160_v0 = vld [vmem:[#allocation8 + $0x1a8] sm:$0xff]  ;;  %v130_v31 = vld [vmem:[#allocation8 + $0xb8] sm:$0xff]  ;;  %v1392_v34 = vcombine.high %v125_v27, %v129_v28 }
  0x59   :  { %537 = vmatpush1.bf16.msra.mxu1 %v1389_v36  ;;  %497 = vmatprep.subr.bf16.mxu0 %v1396_v37  ;;  %v1420_v4 = vcombine.high %v155_v60, %v159_v61  ;;  %v163_v5 = vld [vmem:[#allocation8 + $0x1c0] sm:$0xff]  ;;  %v164_v7 = vld [vmem:[#allocation8 + $0x1c8] sm:$0xff]  ;;  %v1422_v8 = vcombine.high %v156_v63, %v160_v0  ;;  %v1419_v10 = vcombine.low %v155_v60, %v159_v61  ;;  %v133_v36 = vld [vmem:[#allocation8 + $0xd0] sm:$0xff] }
  0x5a   :  { %538 = vmatprep.subr.bf16.mxu1 %v1398_v40  ;;  %v167_v6 = vld [vmem:[#allocation8 + $0x1e0] sm:$0xff]  ;;  %v168_v9 = vld [vmem:[#allocation8 + $0x1e8] sm:$0xff]  ;;  %v1421_v11 = vcombine.low %v156_v63, %v160_v0  ;;  %v1394_v35 = vcombine.high %v126_v30, %v130_v31  ;;  %v137_v37 = vld [vmem:[#allocation8 + $0xf0] sm:$0xff]  ;;  %v1391_v40 = vcombine.low %v125_v27, %v129_v28  ;;  %v1393_v41 = vcombine.low %v126_v30, %v130_v31 }
  0x5b   :  { %v1428_v12 = vcombine.high %v163_v5, %v167_v6  ;;  %v1430_v13 = vcombine.high %v164_v7, %v168_v9  ;;  %v1427_v14 = vcombine.low %v163_v5, %v167_v6  ;;  %v1429_v15 = vcombine.low %v164_v7, %v168_v9  ;;  %v134_v38 = vld [vmem:[#allocation8 + $0xd8] sm:$0xff]  ;;  %v141_v44 = vld [vmem:[#allocation8 + $0x110] sm:$0xff]  ;;  %v1608_v21 = vld [vmem:[#allocation9 + $0x88] sm:$0xff]  }
  0x5c   :  { %498 = vmatpush1.bf16.msra.mxu0 %v1395_v47  ;;  %v138_v39 = vld [vmem:[#allocation8 + $0xf8] sm:$0xff]  ;;  %v1400_v42 = vcombine.high %v133_v36, %v137_v37  ;;  %v145_v45 = vld [vmem:[#allocation8 + $0x130] sm:$0xff]  ;;  %v1617_v30 = vld [vmem:[#allocation9 + $0x60] sm:$0xff]  }
  0x5d   :  { %539 = vmatpush1.bf16.msra.mxu1 %v1397_v50  ;;  %499 = vmatprep.subr.bf16.mxu0 %v1404_v51  ;;  %v1402_v43 = vcombine.high %v134_v38, %v138_v39  ;;  %v142_v46 = vld [vmem:[#allocation8 + $0x118] sm:$0xff]  ;;  %v1408_v50 = vcombine.high %v141_v44, %v145_v45  ;;  %v149_v51 = vld [vmem:[#allocation8 + $0x150] sm:$0xff]  ;;  %v1407_v55 = vcombine.low %v141_v44, %v145_v45  ;;  %v1618_v31 = vld [vmem:[#allocation9 + $0xe0] sm:$0xff]  }
  0x5e   :  { %540 = vmatprep.subr.bf16.mxu1 %v1406_v52  ;;  %v146_v47 = vld [vmem:[#allocation8 + $0x138] sm:$0xff]  ;;  %v153_v52 = vld [vmem:[#allocation8 + $0x170] sm:$0xff] }
  0x5f   :  { %v150_v53 = vld [vmem:[#allocation8 + $0x158] sm:$0xff]  ;;  %v1409_v56 = vcombine.low %v142_v46, %v146_v47  ;;  %v161_v60 = vld [vmem:[#allocation8 + $0x1b0] sm:$0xff]  ;;  %v1415_v63 = vcombine.low %v149_v51, %v153_v52 }
  0x60   :  { %500 = vmatpush1.bf16.msra.mxu0 %v1403_v57  ;;  %v154_v54 = vld [vmem:[#allocation8 + $0x178] sm:$0xff]  ;;  %v1416_v57 = vcombine.high %v149_v51, %v153_v52  ;;  %v169_v5 = vld [vmem:[#allocation8 + $0x1f0] sm:$0xff] }
  0x61   :  { %541 = vmatpush1.bf16.msra.mxu1 %v1405_v58  ;;  %501 = vmatprep.subr.bf16.mxu0 %v1412_v59  ;;  %v1418_v58 = vcombine.high %v150_v53, %v154_v54  ;;  %v157_v59 = vld [vmem:[#allocation8 + $0x190] sm:$0xff]  ;;  %v158_v61 = vld [vmem:[#allocation8 + $0x198] sm:$0xff]  ;;  %v1417_v0 = vcombine.low %v150_v53, %v154_v54 }
  0x62   :  { %542 = vmatprep.subr.bf16.mxu1 %v1414_v62  ;;  %v162_v62 = vld [vmem:[#allocation8 + $0x1b8] sm:$0xff]  ;;  %v1609_v22 = vld [vmem:[#allocation9 + $0x50] sm:$0xff]  }
  0x63   :  { %v166_v6 = vld [vmem:[#allocation8 + $0x1d8] sm:$0xff]  ;;  %v1425_v9 = vcombine.low %v158_v61, %v162_v62  ;;  %v1610_v23 = vld [vmem:[#allocation9 + $0xd0] sm:$0xff]  }
  0x64   :  { %502 = vmatpush1.bf16.msra.mxu0 %v1411_v1  ;;  %v1424_v1 = vcombine.high %v157_v59, %v161_v60  ;;  %v170_v7 = vld [vmem:[#allocation8 + $0x1f8] sm:$0xff]  ;;  %v1611_v24 = vld [vmem:[#allocation9 + $0x10] sm:$0xff]  }
  0x65   :  { %543 = vmatpush1.bf16.msra.mxu1 %v1413_v3  ;;  %503 = vmatprep.subr.bf16.mxu0 %v1420_v4  ;;  %v1426_v3 = vcombine.high %v158_v61, %v162_v62  ;;  %v165_v4 = vld [vmem:[#allocation8 + $0x1d0] sm:$0xff]  ;;  %v1614_v27 = vld [vmem:[#allocation9 + $0xd8] sm:$0xff]   ;;  %v1635_v61 = vld [vmem:[#allocation9 + $0x100] sm:$0xff]  }
  0x66   :  { %544 = vmatprep.subr.bf16.mxu1 %v1422_v8  ;;  %v1423_v8 = vcombine.low %v157_v59, %v161_v60  ;;  %v1615_v28 = vld [vmem:[#allocation9 + $0x18] sm:$0xff]   ;;  %v1636_v62 = vld [vmem:[#allocation9 + $0x180] sm:$0xff]  }
  0x67   :  { %v1631_v44 = vld [vmem:[#allocation9 + $0x38] sm:$0xff]  }
  0x68   :  { %504 = vmatpush1.bf16.msra.mxu0 %v1419_v10  ;;  %v1432_v10 = vcombine.high %v165_v4, %v169_v5  ;;  %v1632_v45 = vld [vmem:[#allocation9 + $0xb8] sm:$0xff]  }
  0x69   :  { %545 = vmatpush1.bf16.msra.mxu1 %v1421_v11  ;;  %505 = vmatprep.subr.bf16.mxu0 %v1428_v12  ;;  %v1434_v11 = vcombine.high %v166_v6, %v170_v7  ;;  %v1431_v12 = vcombine.low %v165_v4, %v169_v5  ;;  %v1639_v4 = vld [vmem:[#allocation9 + $0x108] sm:$0xff]  }
  0x6a   :  { %546 = vmatprep.subr.bf16.mxu1 %v1430_v13  ;;  %v1433_v13 = vcombine.low %v166_v6, %v170_v7  ;;  %v1640_v5 = vld [vmem:[#allocation9 + $0x188] sm:$0xff]   ;;  %v1641_v6 = vld [vmem:[#allocation9 + $0x150] sm:$0xff]  }
  0x6b   :  { %v1642_v7 = vld [vmem:[#allocation9 + $0x1d0] sm:$0xff]  }
  0x6c   :  { %506 = vmatpush1.bf16.msra.mxu0 %v1427_v14  ;;  %v1601_v14 = vld [vmem:[#allocation9 + $0x40] sm:$0xff]  }
  0x6d   :  { %547 = vmatpush1.bf16.msra.mxu1 %v1429_v15  ;;  %573 = vmatprep.subr.bf16.mxu0 %v1376_v16  ;;  %v1602_v15 = vld [vmem:[#allocation9 + $0xc0] sm:$0xff]  }
  0x6e   :  { %614 = vmatprep.subr.bf16.mxu1 %v1378_v17  ;;  %v1603_v16 = vld [vmem:[#allocation9] sm:$0xff]  }
  0x6f   :  { %v1604_v17 = vld [vmem:[#allocation9 + $0x80] sm:$0xff]  }
  0xbe   :  { %v82_v18 = vpop.permute.xlu0 %81 }
  0xbf   :  { %85 = vst.msk [vmem:[#allocation2] sm:$0xf] %vm84_vm2, %v82_v18  ;;  %v1605_v18 = vld [vmem:[#allocation9 + $0x48] sm:$0xff]  }
  0xc2   :  { %v89_v20 = vpop.permute.xlu0 %88 }
  0xc3   :  { %92 = vst.msk [vmem:[#allocation2] sm:$0xf] %vm91_vm3, %v89_v20  ;;  %v1607_v20 = vld [vmem:[#allocation9 + $0x8] sm:$0xff]  }
  0xc4   :  { %v102_v19 = vpop.permute.xlu1 %101 }
  0xc5   :  { %105 = vst.msk [vmem:[#allocation2] sm:$0xf] %vm104_vm4, %v102_v19  ;;  %v1606_v19 = vld [vmem:[#allocation9 + $0xc8] sm:$0xff]  }
  0xcc   :  { %v1904_v29 = vld [vmem:[#allocation2] sm:$0xf] }
  0xcd   :  { %524 = vmatmul.mubr.bf16.vlgmr.msra.gmra.mrb[0].mxu0 %v1904_v29  ;;  %565 = vmatmul.mubr.bf16.vlgmr.msra.gmra.mrb[0].mxu1 %v1904_v29 }
  0xce   :  { %574 = vmatpush1.bf16.msra.mxu0 %v1375_v48  ;;  %615 = vmatpush1.bf16.msra.mxu1 %v1377_v49  ;;  %v1399_v48 = vcombine.low %v133_v36, %v137_v37  ;;  %v1401_v49 = vcombine.low %v134_v38, %v138_v39  ;;  %v1623_v36 = vld [vmem:[#allocation9 + $0x28] sm:$0xff]   ;;  %v1625_v38 = vld [vmem:[#allocation9 + $0x70] sm:$0xff]  }
  0xcf   :  { %575 = vmatprep.subr.bf16.mxu0 %v1384_v25  ;;  %616 = vmatprep.subr.bf16.mxu1 %v1386_v26  ;;  %v1612_v25 = vld [vmem:[#allocation9 + $0x90] sm:$0xff]   ;;  %v1613_v26 = vld [vmem:[#allocation9 + $0x58] sm:$0xff]   ;;  %v1624_v37 = vld [vmem:[#allocation9 + $0xa8] sm:$0xff]  }
  0xd0   :  { %605 = vmatprep.mubr.bf16.mxu0 %v1791_v2  ;;  %646 = vmatprep.mubr.bf16.mxu1 %v1791_v2  ;;  %v1410_v2 = vcombine.high %v142_v46, %v146_v47  ;;  %v1626_v39 = vld [vmem:[#allocation9 + $0xf0] sm:$0xff]   ;;  %v1633_v46 = vld [vmem:[#allocation9 + $0x140] sm:$0xff]  }
  0xd1   :  { %v1634_v47 = vld [vmem:[#allocation9 + $0x1c0] sm:$0xff]  }
  0xd2   :  { %576 = vmatpush1.bf16.msra.mxu0 %v1383_v32  ;;  %617 = vmatpush1.bf16.msra.mxu1 %v1385_v33  ;;  %v1619_v32 = vld [vmem:[#allocation9 + $0x20] sm:$0xff]  }
  0xd3   :  { %577 = vmatprep.subr.bf16.mxu0 %v1392_v34  ;;  %618 = vmatprep.subr.bf16.mxu1 %v1394_v35  ;;  %v1620_v33 = vld [vmem:[#allocation9 + $0xa0] sm:$0xff]   ;;  %v1621_v34 = vld [vmem:[#allocation9 + $0x68] sm:$0xff]  }
  0xd4   :  { %v1622_v35 = vld [vmem:[#allocation9 + $0xe8] sm:$0xff]  }
  0xd6   :  { %578 = vmatpush1.bf16.msra.mxu0 %v1391_v40  ;;  %619 = vmatpush1.bf16.msra.mxu1 %v1393_v41  ;;  %v1627_v40 = vld [vmem:[#allocation9 + $0x30] sm:$0xff]  }
  0xd7   :  { %579 = vmatprep.subr.bf16.mxu0 %v1400_v42  ;;  %620 = vmatprep.subr.bf16.mxu1 %v1402_v43  ;;  %v1628_v41 = vld [vmem:[#allocation9 + $0xb0] sm:$0xff]   ;;  %v1629_v42 = vld [vmem:[#allocation9 + $0x78] sm:$0xff]  }
  0xd8   :  { %v1630_v43 = vld [vmem:[#allocation9 + $0xf8] sm:$0xff]  }
  0xda   :  { %580 = vmatpush1.bf16.msra.mxu0 %v1399_v48  ;;  %621 = vmatpush1.bf16.msra.mxu1 %v1401_v49 }
  0xdb   :  { %581 = vmatprep.subr.bf16.mxu0 %v1408_v50  ;;  %622 = vmatprep.subr.bf16.mxu1 %v1410_v2 }
  0xde   :  { %582 = vmatpush1.bf16.msra.mxu0 %v1407_v55  ;;  %623 = vmatpush1.bf16.msra.mxu1 %v1409_v56 }
  0xdf   :  { %583 = vmatprep.subr.bf16.mxu0 %v1416_v57  ;;  %624 = vmatprep.subr.bf16.mxu1 %v1418_v58 }
  0xe2   :  { %584 = vmatpush1.bf16.msra.mxu0 %v1415_v63  ;;  %625 = vmatpush1.bf16.msra.mxu1 %v1417_v0 }
  0xe3   :  { %585 = vmatprep.subr.bf16.mxu0 %v1424_v1  ;;  %626 = vmatprep.subr.bf16.mxu1 %v1426_v3  ;;  %v1637_v1 = vld [vmem:[#allocation9 + $0x148] sm:$0xff]  }
  0xe4   :  { %v1638_v3 = vld [vmem:[#allocation9 + $0x1c8] sm:$0xff]  }
  0xe6   :  { %586 = vmatpush1.bf16.msra.mxu0 %v1423_v8  ;;  %627 = vmatpush1.bf16.msra.mxu1 %v1425_v9  ;;  %v1643_v8 = vld [vmem:[#allocation9 + $0x110] sm:$0xff]  }
  0xe7   :  { %587 = vmatprep.subr.bf16.mxu0 %v1432_v10  ;;  %628 = vmatprep.subr.bf16.mxu1 %v1434_v11  ;;  %v1644_v9 = vld [vmem:[#allocation9 + $0x190] sm:$0xff]   ;;  %v1645_v10 = vld [vmem:[#allocation9 + $0x158] sm:$0xff]  }
  0xe8   :  { %v1646_v11 = vld [vmem:[#allocation9 + $0x1d8] sm:$0xff]  }
  0xea   :  { %588 = vmatpush1.bf16.msra.mxu0 %v1431_v12  ;;  %629 = vmatpush1.bf16.msra.mxu1 %v1433_v13  ;;  %v1647_v12 = vld [vmem:[#allocation9 + $0x118] sm:$0xff]  }
  0xeb   :  { %1501 = vmatprep.subr.bf16.mxu0 %v1601_v14  ;;  %1523 = vmatprep.subr.bf16.mxu1 %v1602_v15  ;;  %v1648_v13 = vld [vmem:[#allocation9 + $0x198] sm:$0xff]   ;;  %v1649_v14 = vld [vmem:[#allocation9 + $0x160] sm:$0xff]  }
  0xec   :  { %v1650_v15 = vld [vmem:[#allocation9 + $0x1e0] sm:$0xff]  }
  0xed   :  { %606 = vmatmul.mubr.bf16.vlgmr.msra.gmra.mrb[4].mxu0 %v1904_v29  ;;  %647 = vmatmul.mubr.bf16.vlgmr.msra.gmra.mrb[4].mxu1 %v1904_v29  ;;  %v1616_v29 = vld [vmem:[#allocation9 + $0x98] sm:$0xff]  }
  0xee   :  { %1502 = vmatpush3.bf16.msra.mxu0 %v1603_v16  ;;  %1524 = vmatpush3.bf16.msra.mxu1 %v1604_v17  ;;  %v1651_v16 = vld [vmem:[#allocation9 + $0x120] sm:$0xff]  }
  0xef   :  { %1503 = vmatprep.subr.bf16.mxu0 %v1605_v18  ;;  %1525 = vmatprep.subr.bf16.mxu1 %v1606_v19  ;;  %v1652_v17 = vld [vmem:[#allocation9 + $0x1a0] sm:$0xff]   ;;  %v1653_v18 = vld [vmem:[#allocation9 + $0x168] sm:$0xff]  }
  0xf0   :  { %v1654_v19 = vld [vmem:[#allocation9 + $0x1e8] sm:$0xff]  }
  0xf2   :  { %1504 = vmatpush3.bf16.msra.mxu0 %v1607_v20  ;;  %1526 = vmatpush3.bf16.msra.mxu1 %v1608_v21  ;;  %v1655_v20 = vld [vmem:[#allocation9 + $0x128] sm:$0xff]  }
  0xf3   :  { %1505 = vmatprep.subr.bf16.mxu0 %v1609_v22  ;;  %1527 = vmatprep.subr.bf16.mxu1 %v1610_v23  ;;  %v1656_v21 = vld [vmem:[#allocation9 + $0x1a8] sm:$0xff]   ;;  %v1657_v22 = vld [vmem:[#allocation9 + $0x170] sm:$0xff]  }
  0xf4   :  { %v1658_v23 = vld [vmem:[#allocation9 + $0x1f0] sm:$0xff]  }
  0xf6   :  { %1506 = vmatpush3.bf16.msra.mxu0 %v1611_v24  ;;  %1528 = vmatpush3.bf16.msra.mxu1 %v1612_v25  ;;  %v1659_v24 = vld [vmem:[#allocation9 + $0x130] sm:$0xff]  }
  0xf7   :  { %1507 = vmatprep.subr.bf16.mxu0 %v1613_v26  ;;  %1529 = vmatprep.subr.bf16.mxu1 %v1614_v27  ;;  %v1660_v25 = vld [vmem:[#allocation9 + $0x1b0] sm:$0xff]   ;;  %v1661_v26 = vld [vmem:[#allocation9 + $0x178] sm:$0xff]  }
  0xf8   :  { %v1662_v27 = vld [vmem:[#allocation9 + $0x1f8] sm:$0xff]  }
  0xfa   :  { %1508 = vmatpush3.bf16.msra.mxu0 %v1615_v28  ;;  %1530 = vmatpush3.bf16.msra.mxu1 %v1616_v29 }
  0xfb   :  { %1509 = vmatprep.subr.bf16.mxu0 %v1617_v30  ;;  %1531 = vmatprep.subr.bf16.mxu1 %v1618_v31  ;;  %v1663_v30 = vld [vmem:[#allocation9 + $0x138] sm:$0xff]  }
  0xfc   :  { %v1664_v31 = vld [vmem:[#allocation9 + $0x1b8] sm:$0xff]  }
  0xfe   :  { %1510 = vmatpush3.bf16.msra.mxu0 %v1619_v32  ;;  %1532 = vmatpush3.bf16.msra.mxu1 %v1620_v33 }
  0xff   :  { %1511 = vmatprep.subr.bf16.mxu0 %v1621_v34  ;;  %1533 = vmatprep.subr.bf16.mxu1 %v1622_v35 }
 0x102   :  { %1512 = vmatpush3.bf16.msra.mxu0 %v1623_v36  ;;  %1534 = vmatpush3.bf16.msra.mxu1 %v1624_v37 }
 0x103   :  { %1513 = vmatprep.subr.bf16.mxu0 %v1625_v38  ;;  %1535 = vmatprep.subr.bf16.mxu1 %v1626_v39 }
 0x106   :  { %1514 = vmatpush3.bf16.msra.mxu0 %v1627_v40  ;;  %1536 = vmatpush3.bf16.msra.mxu1 %v1628_v41 }
 0x107   :  { %1515 = vmatprep.subr.bf16.mxu0 %v1629_v42  ;;  %1537 = vmatprep.subr.bf16.mxu1 %v1630_v43 }
 0x10a   :  { %1516 = vmatpush3.bf16.msra.mxu0 %v1631_v44  ;;  %1538 = vmatpush3.bf16.msra.mxu1 %v1632_v45 }
 0x10b   :  { %1545 = vmatprep.subr.bf16.mxu0 %v1633_v46  ;;  %1567 = vmatprep.subr.bf16.mxu1 %v1634_v47 }
 0x1a0   :  { %v525_v48 = vpop.f32.mrb[0].mxu0  ;;  %v566_v49 = vpop.f32.mrb[0].mxu1 }
 0x1a1   :  { %v655_v50 = vmax.f32 %v525_v48, 0.0  ;;  %v657_v2 = vmax.f32 %v566_v49, 0.0  ;;  %v527_v51 = vpop.f32.mrb[1].mxu0  ;;  %v568_v52 = vpop.f32.mrb[1].mxu1 }
 0x1a2   :  { %v656_v53 = vmax.f32 %v527_v51, 0.0  ;;  %v658_v54 = vmax.f32 %v568_v52, 0.0  ;;  %v529_v55 = vpop.f32.mrb[2].mxu0  ;;  %v570_v56 = vpop.f32.mrb[2].mxu1 }
 0x1a3   :  { %v530_v57 = vpop.f32.mrb[3].mxu0  ;;  %v571_v58 = vpop.f32.mrb[3].mxu1  ;;  %v663_v63 = vpack.c.bf16 %v655_v50, %v655_v50  ;;  %v665_v0 = vpack.c.bf16 %v657_v2, %v657_v2 }
 0x1a4   :  { %v664_v59 = vpack.c.bf16 %v656_v53, %v656_v53  ;;  %v666_v60 = vpack.c.bf16 %v658_v54, %v658_v54 }
 0x1a6   :  { %1215 = vmatprep.mubr.bf16.mxu0 %v664_v59  ;;  %1255 = vmatprep.mubr.bf16.mxu1 %v666_v60 }
 0x1a7   :  { %1216 = vmatmul.mubr.bf16.vlgmr.msra.gmra.mrb[8].mxu0 %v663_v63  ;;  %1256 = vmatmul.mubr.bf16.vlgmr.msra.gmra.mrb[8].mxu1 %v665_v0 }
 0x1a8   :  { %1546 = vmatpush3.bf16.msra.mxu0 %v1635_v61  ;;  %1568 = vmatpush3.bf16.msra.mxu1 %v1636_v62 }
 0x1a9   :  { %1547 = vmatprep.subr.bf16.mxu0 %v1637_v1  ;;  %1569 = vmatprep.subr.bf16.mxu1 %v1638_v3 }
 0x1ac   :  { %1548 = vmatpush3.bf16.msra.mxu0 %v1639_v4  ;;  %1570 = vmatpush3.bf16.msra.mxu1 %v1640_v5  ;;  %v1499_v4 = vld [vmem:[%s1938_s5] ss:$0 sm:$0xff] }
 0x1ad   :  { %1549 = vmatprep.subr.bf16.mxu0 %v1641_v6  ;;  %1571 = vmatprep.subr.bf16.mxu1 %v1642_v7 }
 0x1b0   :  { %1550 = vmatpush3.bf16.msra.mxu0 %v1643_v8  ;;  %1572 = vmatpush3.bf16.msra.mxu1 %v1644_v9 }
 0x1b1   :  { %1551 = vmatprep.subr.bf16.mxu0 %v1645_v10  ;;  %1573 = vmatprep.subr.bf16.mxu1 %v1646_v11 }
 0x1b4   :  { %1552 = vmatpush3.bf16.msra.mxu0 %v1647_v12  ;;  %1574 = vmatpush3.bf16.msra.mxu1 %v1648_v13 }
 0x1b5   :  { %1553 = vmatprep.subr.bf16.mxu0 %v1649_v14  ;;  %1575 = vmatprep.subr.bf16.mxu1 %v1650_v15 }
 0x1b8   :  { %1554 = vmatpush3.bf16.msra.mxu0 %v1651_v16  ;;  %1576 = vmatpush3.bf16.msra.mxu1 %v1652_v17 }
 0x1b9   :  { %1555 = vmatprep.subr.bf16.mxu0 %v1653_v18  ;;  %1577 = vmatprep.subr.bf16.mxu1 %v1654_v19 }
 0x1bc   :  { %1556 = vmatpush3.bf16.msra.mxu0 %v1655_v20  ;;  %1578 = vmatpush3.bf16.msra.mxu1 %v1656_v21 }
 0x1bd   :  { %1557 = vmatprep.subr.bf16.mxu0 %v1657_v22  ;;  %1579 = vmatprep.subr.bf16.mxu1 %v1658_v23 }
 0x1c0   :  { %v607_v28 = vpop.f32.mrb[4].mxu0  ;;  %v648_v29 = vpop.f32.mrb[4].mxu1  ;;  %1558 = vmatpush3.bf16.msra.mxu0 %v1659_v24  ;;  %1580 = vmatpush3.bf16.msra.mxu1 %v1660_v25 }
 0x1c1   :  { %v659_v32 = vmax.f32 %v607_v28, 0.0  ;;  %v661_v33 = vmax.f32 %v648_v29, 0.0  ;;  %v609_v34 = vpop.f32.mrb[5].mxu0  ;;  %v650_v35 = vpop.f32.mrb[5].mxu1  ;;  %1559 = vmatprep.subr.bf16.mxu0 %v1661_v26  ;;  %1581 = vmatprep.subr.bf16.mxu1 %v1662_v27 }
 0x1c2   :  { %v660_v36 = vmax.f32 %v609_v34, 0.0  ;;  %v662_v37 = vmax.f32 %v650_v35, 0.0  ;;  %v611_v38 = vpop.f32.mrb[6].mxu0  ;;  %v652_v39 = vpop.f32.mrb[6].mxu1 }
 0x1c3   :  { %v612_v40 = vpop.f32.mrb[7].mxu0  ;;  %v653_v41 = vpop.f32.mrb[7].mxu1  ;;  %v667_v44 = vpack.c.bf16 %v659_v32, %v659_v32  ;;  %v669_v45 = vpack.c.bf16 %v661_v33, %v661_v33 }
 0x1c4   :  { %v668_v42 = vpack.c.bf16 %v660_v36, %v660_v36  ;;  %v670_v43 = vpack.c.bf16 %v662_v37, %v662_v37  ;;  %1560 = vmatpush3.bf16.msra.mxu0 %v1663_v30  ;;  %1582 = vmatpush3.bf16.msra.mxu1 %v1664_v31 }
 0x1c6   :  { %1295 = vmatprep.mubr.bf16.mxu0 %v668_v42  ;;  %1335 = vmatprep.mubr.bf16.mxu1 %v670_v43 }
 0x1c7   :  { %1296 = vmatmul.mubr.bf16.vlgmr.msra.gmra.mrb[12].mxu0 %v667_v44  ;;  %1336 = vmatmul.mubr.bf16.vlgmr.msra.gmra.mrb[12].mxu1 %v669_v45 }
 0x27a   :  { %v1517_v46 = vpop.f32.mrb[8].mxu0  ;;  %v1539_v47 = vpop.f32.mrb[8].mxu1 }
 0x27b   :  { %v1518_v48 = vpop.f32.mrb[9].mxu0  ;;  %v1540_v49 = vpop.f32.mrb[9].mxu1 }
 0x27c   :  { %v1519_v50 = vadd.f32 %v1518_v48, %v1517_v46  ;;  %v1541_v2 = vadd.f32 %v1540_v49, %v1539_v47  ;;  %v1520_v51 = vpop.f32.mrb[10].mxu0  ;;  %v1542_v52 = vpop.f32.mrb[10].mxu1 }
 0x27d   :  { %v1521_v53 = vpop.f32.mrb[11].mxu0  ;;  %v1543_v54 = vpop.f32.mrb[11].mxu1 }
 0x27e   :  { %v1258_v55 = vadd.f32 %v1541_v2, %v1519_v50 }
 0x29a   :  { %v1561_v56 = vpop.f32.mrb[12].mxu0  ;;  %v1583_v57 = vpop.f32.mrb[12].mxu1 }
 0x29b   :  { %v1562_v58 = vpop.f32.mrb[13].mxu0  ;;  %v1584_v59 = vpop.f32.mrb[13].mxu1 }
 0x29c   :  { %v1563_v60 = vadd.f32 %v1562_v58, %v1561_v56  ;;  %v1585_v61 = vadd.f32 %v1584_v59, %v1583_v57  ;;  %v1564_v62 = vpop.f32.mrb[14].mxu0  ;;  %v1586_v63 = vpop.f32.mrb[14].mxu1 }
 0x29d   :  { %v1565_v0 = vpop.f32.mrb[15].mxu0  ;;  %v1587_v1 = vpop.f32.mrb[15].mxu1 }
 0x29e   :  { %v1298_v3 = vadd.f32 %v1563_v60, %v1258_v55 }
 0x2a0   :  { %v1338_v5 = vadd.f32 %v1585_v61, %v1298_v3 }
 0x2a2   :  { %v1350_v6 = vadd.f32 %v1499_v4, %v1338_v5 }
 0x2a4   :  { %1352 = vst.msk [vmem:[#allocation11] sm:$0xff] %vm1351_vm5, %v1350_v6 }
 0x2a5   :  { %1764 = shalt.err (!%p1761_p8)
}
 0x2a6   :  { %s1765_s30 = scalar_lea.hbm %s1939_s6, 128 }
 0x2a7   :  { %p1766_p9 = scmp.ne.s32.totalorder %s1939_s6, %s1765_s30  ;;  %p1769_p10 = scmp.lt.u32.totalorder %s1765_s30, %s1939_s6 }
 0x2a9   :  { %p1771_p11 = pnand %p1769_p10, %p1766_p9 }
 0x2ab   :  { %1774 = shalt.err (!%p1771_p11)
}
 0x2ac   :  { %1362 = dma.vmem_to_hbm [thread:$0]  %s1360_s26, 128, %s1939_s6, [#allocation5]  }
 0x2ad   :  { %1781 = dma.done.wait [#allocation5], 128  }
 0x2ae   :  { %1782 = vsyncadd [#allocation5], 4294967168 }
 0x2af   :  { %1366 = vsyncpa [#allocation4], 1 }
 0x2b0   :  { %1367 = vsyncpa [#allocation7], 1 }
 0x2b1   :  { %1368 = vsyncpa [#allocation10], 1 }
 0x2b2   :  { %1369 = vsyncpa [#allocation5], 1 }

</bundles_post_ra>
